<compile_context>
chip_gen: v5e
topology: v5e:2x2
jax: 0.10.0
libtpu: 0.0.40
codegen_flags: <defaults>
</compile_context>

<pallas_src>
import functools

import jax
import jax.numpy as jnp
import numpy as np
from jax.experimental import pallas as pl
from jax.experimental.pallas import tpu as pltpu


def _round_up(x, m):
    return ((x + m - 1) // m) * m


def _actor_critic_eval_kernel(state_ref, action_ref,
                              w1_ref, b1_ref, w2_ref, b2_ref,
                              out_ref, *, tanh_in_bf16):
    """Fused evaluate() for one batch tile.

    state_ref  : [TB, S]    bf16
    action_ref : [TB, 1]    int32
    w1_ref     : [S, 2H]    bf16   (actor | value first layers stacked on lanes)
    b1_ref     : [1, 2H]    f32
    w2_ref     : [2H, A+1]  bf16   (block-diagonal: actor 2nd layer | value 2nd layer)
    b2_ref     : [1, A+1]   f32
    out_ref    : [8, TB]    f32    rows: 0=log_prob(action), 1=value, 2=entropy, 3..7=pad
    """
    x = state_ref[...]                                                   # [TB, S] bf16

    # ---- fused first layers: Linear (f32 accumulate) -> Tanh ----
    acc1 = jnp.dot(x, w1_ref[...],
                   preferred_element_type=jnp.float32) + b1_ref[...]     # [TB, 2H] f32
    if tanh_in_bf16:
        # v6e/v7x: bf16 EUP halves the tanh pushes; h is needed in bf16 for the MXU anyway.
        h = jnp.tanh(acc1.astype(jnp.bfloat16))                          # [TB, 2H] bf16
    else:
        # v5e: no bf16 EUP -> keep tanh in f32, cast afterwards for the MXU.
        h = jnp.tanh(acc1).astype(jnp.bfloat16)                          # [TB, 2H] bf16

    # ---- fused second layers (block-diagonal): logits | value ----
    z_all = jnp.dot(h, w2_ref[...],
                    preferred_element_type=jnp.float32) + b2_ref[...]    # [TB, A+1] f32

    A = z_all.shape[-1] - 1
    TB = z_all.shape[0]
    logits = z_all[:, :A]                                                # [TB, A]
    value = z_all[:, A:]                                                 # [TB, 1]

    # ---- softmax statistics (no probs materialized) ----
    m = jnp.max(logits, axis=-1, keepdims=True)
    z = logits - m
    e = jnp.exp(z)
    s = jnp.sum(e, axis=-1, keepdims=True)
    log_s = jnp.log(s)
    inv_s = pl.reciprocal(s, approx=True)                                # EUP slot

    # ---- Categorical(action_probs).log_prob(action): select z[action] - log(s) ----
    act = action_ref[...]                                                # [TB, 1] int32
    col = jax.lax.broadcasted_iota(jnp.int32, (TB, A), 1)
    logp = jnp.sum(jnp.where(col == act, z, 0.0),
                   axis=-1, keepdims=True) - log_s                       # [TB, 1]

    # ---- entropy: -sum p*log p  ==  log(s) - sum(e*z)/s ----
    ent = log_s - jnp.sum(e * z, axis=-1, keepdims=True) * inv_s         # [TB, 1]

    # ---- lane-dense packed store: batch on lanes, rows 0/1/2 = logp/value/entropy ----
    packed = jnp.concatenate(
        [logp, value, ent, jnp.zeros((TB, 5), jnp.float32)], axis=1)     # [TB, 8]
    out_ref[...] = jnp.transpose(packed)                                 # [8, TB] (XLU)


def _tpu_defaults():
    """Returns (use_bf16_tanh, default_block_b) for the current TPU generation."""
    try:
        kind = jax.devices()[0].device_kind.lower()
    except Exception:  # pragma: no cover - defensive
        kind = ""
    modern = ("v6" in kind) or ("v7" in kind) or ("tpu7" in kind)
    # v5e and older: f32 tanh (no bf16 EUP) and a smaller tile (16 MiB scoped default,
    # ~0.82 TB/s HBM roofline is hit with a smaller tile anyway).
    return modern, (8192 if modern else 4096)


def actor_critic_evaluate(state, action, packed, *, block_b=None, tanh_in_bf16=None):
    """Pallas equivalent of ActorCritic.evaluate(state, action).

    Returns (action_logprobs [B], state_value [B], dist_entropy [B])."""
    B, S = state.shape
    H2 = packed["w1"].shape[1]        # 2 * n_latent_var
    AP1 = packed["w2"].shape[1]       # action_dim + 1

    default_bf16, default_bb = _tpu_defaults()
    if tanh_in_bf16 is None:
        tanh_in_bf16 = default_bf16
    if block_b is None:
        block_b = default_bb

    # Batch tile:
    #  * multiple of 128 so the (8, TB) lane-dense output block is lane-aligned
    #    (also satisfies bf16 (16, 128) sublane packing on the state stream);
    #  * capped at ceil(B/2) so large batches always produce >= 2 grid steps
    #    (lets ("parallel",) use both v7x TensorCores);
    #  * capped at block_b so the lane-padded f32 temps stay inside scoped VMEM.
    block_b = _round_up(max(int(block_b), 128), 128)
    TB = min(block_b, _round_up(pl.cdiv(B, 2), 128))
    grid = (pl.cdiv(B, TB),)

    # VMEM budget: double-buffered streams (~TB*100 B) + a few lane-padded
    # [TB, 128] f32 temps (~TB*512 B each, 3-4 live)  ->  ~TB*4 KiB + headroom.
    # Clamp to 40 MiB (fits v7x's 64 MiB physical; raises v5e's 16 MiB scoped default).
    vmem_limit_bytes = int(min(40 << 20, max(16 << 20, TB * 4096 + (4 << 20))))

    state_bf16 = state.astype(jnp.bfloat16)
    action2d = action.astype(jnp.int32).reshape(B, 1)

    kernel = functools.partial(_actor_critic_eval_kernel,
                               tanh_in_bf16=bool(tanh_in_bf16))

    out = pl.pallas_call(
        kernel,
        out_shape=jax.ShapeDtypeStruct((8, B), jnp.float32),
        grid=grid,
        in_specs=[
            pl.BlockSpec((TB, S), lambda i: (i, 0)),       # state: streamed per tile
            pl.BlockSpec((TB, 1), lambda i: (i, 0)),       # action: streamed per tile
            pl.BlockSpec((S, H2), lambda i: (0, 0)),       # weights/biases: resident
            pl.BlockSpec((1, H2), lambda i: (0, 0)),
            pl.BlockSpec((H2, AP1), lambda i: (0, 0)),
            pl.BlockSpec((1, AP1), lambda i: (0, 0)),
        ],
        out_specs=pl.BlockSpec((8, TB), lambda i: (0, i)),
        compiler_params=pltpu.CompilerParams(
            dimension_semantics=("parallel",),
            vmem_limit_bytes=vmem_limit_bytes),
    )(state_bf16, action2d,
      packed["w1"], packed["b1"], packed["w2"], packed["b2"])

    return out[0, :], out[1, :], out[2, :]


def pack_params(raw):
    """Pack per-head f32 params into fused bf16 matmul weights + f32 biases.

    raw weights are stored [in, out] (so the kernel does x @ W + b, matching
    nn.Linear which stores W as [out, in])."""
    w1a, b1a, w2a, b2a = raw["w1a"], raw["b1a"], raw["w2a"], raw["b2a"]
    w1v, b1v, w2v, b2v = raw["w1v"], raw["b1v"], raw["w2v"], raw["b2v"]
    S, H = w1a.shape
    A = w2a.shape[1]

    w1 = jnp.concatenate([w1a, w1v], axis=1).astype(jnp.bfloat16)        # [S, 2H]
    b1 = jnp.concatenate([b1a, b1v], axis=1).astype(jnp.float32)         # [1, 2H]

    w2 = jnp.zeros((2 * H, A + 1), jnp.float32)
    w2 = w2.at[:H, :A].set(w2a)                                          # actor block
    w2 = w2.at[H:, A:].set(w2v)                                          # value block
    w2 = w2.astype(jnp.bfloat16)                                         # [2H, A+1]
    b2 = jnp.concatenate([b2a, b2v], axis=1).astype(jnp.float32)         # [1, A+1]

    return dict(w1=w1, b1=b1, w2=w2, b2=b2)


def init_params(key, state_dim, action_dim, n_latent_var):
    """Deterministic init mimicking nn.Linear (uniform +/- 1/sqrt(fan_in)).
    Weights stored [in, out]; biases [1, out] (2-D for TPU layout)."""
    ks = jax.random.split(key, 8)

    def lin(kw, kb, fan_in, fan_out):
        bound = 1.0 / np.sqrt(fan_in)
        w = jax.random.uniform(kw, (fan_in, fan_out), jnp.float32, -bound, bound)
        b = jax.random.uniform(kb, (1, fan_out), jnp.float32, -bound, bound)
        return w, b

    w1a, b1a = lin(ks[0], ks[1], state_dim, n_latent_var)
    w2a, b2a = lin(ks[2], ks[3], n_latent_var, action_dim)
    w1v, b1v = lin(ks[4], ks[5], state_dim, n_latent_var)
    w2v, b2v = lin(ks[6], ks[7], n_latent_var, 1)
    return dict(w1a=w1a, b1a=b1a, w2a=w2a, b2a=b2a,
                w1v=w1v, b1v=b1v, w2v=w2v, b2v=b2v)


def _reference_evaluate(state, action, p):
    """Pure-JAX f32 reference of the PyTorch evaluate() semantics."""
    h_a = jnp.tanh(state @ p["w1a"] + p["b1a"])
    logits = h_a @ p["w2a"] + p["b2a"]
    log_probs = jax.nn.log_softmax(logits, axis=-1)
    probs = jax.nn.softmax(logits, axis=-1)
    logp = jnp.take_along_axis(log_probs, action[:, None].astype(jnp.int32), axis=-1)[:, 0]
    ent = -jnp.sum(probs * log_probs, axis=-1)
    h_v = jnp.tanh(state @ p["w1v"] + p["b1v"])
    val = (h_v @ p["w2v"] + p["b2v"])[:, 0]
    return logp, val, ent


if __name__ == "__main__":
    # small shapes consistent with the module: state_dim=16, action_dim=4,
    # n_latent_var=32, batch=8
    STATE_DIM, ACTION_DIM, HIDDEN, BATCH = 16, 4, 32, 8

    key = jax.random.PRNGKey(0)
    k_params, k_state, k_act = jax.random.split(key, 3)

    raw = init_params(k_params, STATE_DIM, ACTION_DIM, HIDDEN)
    packed = pack_params(raw)

    state = jax.random.normal(k_state, (BATCH, STATE_DIM), jnp.float32)
    action = jax.random.randint(k_act, (BATCH,), 0, ACTION_DIM, jnp.int32)

    logp, value, entropy = actor_critic_evaluate(state, action, packed)
    jax.block_until_ready((logp, value, entropy))

    # sanity check against a pure-JAX f32 reference of the PyTorch semantics.
    # Tolerance covers bf16 matmul/tanh inputs + approx reciprocal.
    logp_r, val_r, ent_r = _reference_evaluate(state, action, raw)
    assert np.allclose(np.asarray(logp), np.asarray(logp_r), atol=5e-2, rtol=5e-2)
    assert np.allclose(np.asarray(value), np.asarray(val_r), atol=5e-2, rtol=5e-2)
    assert np.allclose(np.asarray(entropy), np.asarray(ent_r), atol=5e-2, rtol=5e-2)

    print("KERNEL_OK")
</pallas_src>

<mosaic_0001>
module attributes {stable_mosaic.version = 11 : i64} {
  func.func @_actor_critic_eval_kernel(%arg0: i32, %arg1: memref<128x16xbf16, #tpu.memory_space<vmem>>, %arg2: memref<128x1xi32, #tpu.memory_space<vmem>>, %arg3: memref<16x64xbf16, #tpu.memory_space<vmem>>, %arg4: memref<1x64xf32, #tpu.memory_space<vmem>>, %arg5: memref<64x5xbf16, #tpu.memory_space<vmem>>, %arg6: memref<1x5xf32, #tpu.memory_space<vmem>>, %arg7: memref<8x128xf32, #tpu.memory_space<vmem>>) attributes {dimension_semantics = [#tpu.dimension_semantics<parallel>], iteration_bounds = array<i64: 1>, scalar_prefetch = 0 : i64, scratch_operands = 0 : i64, tpu.core_type = #tpu.core_type<tc>, window_params = [{transform_indices = @transform_0, window_bounds = array<i64: 128, 16>}, {transform_indices = @transform_1, window_bounds = array<i64: 128, 1>}, {pipeline_mode = #tpu.pipeline_mode<synchronous>, transform_indices = @transform_2, window_bounds = array<i64: 16, 64>}, {pipeline_mode = #tpu.pipeline_mode<synchronous>, transform_indices = @transform_3, window_bounds = array<i64: 1, 64>}, {pipeline_mode = #tpu.pipeline_mode<synchronous>, transform_indices = @transform_4, window_bounds = array<i64: 64, 5>}, {pipeline_mode = #tpu.pipeline_mode<synchronous>, transform_indices = @transform_5, window_bounds = array<i64: 1, 5>}, {transform_indices = @transform_6, window_bounds = array<i64: 8, 128>}]} {
    %c0 = arith.constant 0 : index
    %c0_0 = arith.constant 0 : index
    %0 = vector.load %arg1[%c0, %c0_0] : memref<128x16xbf16, #tpu.memory_space<vmem>>, vector<128x16xbf16>
    %c0_1 = arith.constant 0 : index
    %c0_2 = arith.constant 0 : index
    %1 = vector.load %arg3[%c0_1, %c0_2] : memref<16x64xbf16, #tpu.memory_space<vmem>>, vector<16x64xbf16>
    %cst = arith.constant dense<0.000000e+00> : vector<128x64xf32>
    %2 = tpu.matmul %0, %1, %cst {dimension_numbers = #tpu.dot_dimension_numbers<[1], [0], [0], [1], [0, 0, 1, 1], [], []>} : vector<128x16xbf16>, vector<16x64xbf16>, vector<128x64xf32> -> vector<128x64xf32>
    %c0_3 = arith.constant 0 : index
    %c0_4 = arith.constant 0 : index
    %3 = vector.load %arg4[%c0_3, %c0_4] : memref<1x64xf32, #tpu.memory_space<vmem>>, vector<1x64xf32>
    %4 = vector.broadcast %3 : vector<1x64xf32> to vector<128x64xf32>
    %5 = arith.addf %2, %4 : vector<128x64xf32>
    %6 = math.tanh %5 : vector<128x64xf32>
    %7 = arith.truncf %6 : vector<128x64xf32> to vector<128x64xbf16>
    %c0_5 = arith.constant 0 : index
    %c0_6 = arith.constant 0 : index
    %8 = vector.load %arg5[%c0_5, %c0_6] : memref<64x5xbf16, #tpu.memory_space<vmem>>, vector<64x5xbf16>
    %cst_7 = arith.constant dense<0.000000e+00> : vector<128x5xf32>
    %9 = tpu.matmul %7, %8, %cst_7 {dimension_numbers = #tpu.dot_dimension_numbers<[1], [0], [0], [1], [0, 0, 1, 1], [], []>} : vector<128x64xbf16>, vector<64x5xbf16>, vector<128x5xf32> -> vector<128x5xf32>
    %c0_8 = arith.constant 0 : index
    %c0_9 = arith.constant 0 : index
    %10 = vector.load %arg6[%c0_8, %c0_9] : memref<1x5xf32, #tpu.memory_space<vmem>>, vector<1x5xf32>
    %11 = vector.broadcast %10 : vector<1x5xf32> to vector<128x5xf32>
    %12 = arith.addf %9, %11 : vector<128x5xf32>
    %13 = vector.extract_strided_slice %12 {offsets = [0, 0], sizes = [128, 4], strides = [1, 1]} : vector<128x5xf32> to vector<128x4xf32>
    %14 = vector.extract_strided_slice %12 {offsets = [0, 4], sizes = [128, 1], strides = [1, 1]} : vector<128x5xf32> to vector<128x1xf32>
    %cst_10 = arith.constant dense<0xFF800000> : vector<128xf32>
    %15 = vector.multi_reduction <maximumf>, %13, %cst_10 [1] : vector<128x4xf32> to vector<128xf32>
    %16 = vector.shape_cast %15 : vector<128xf32> to vector<128x1xf32>
    %17 = vector.broadcast %16 : vector<128x1xf32> to vector<128x4xf32>
    %18 = arith.subf %13, %17 : vector<128x4xf32>
    %19 = math.exp %18 : vector<128x4xf32>
    %cst_11 = arith.constant dense<0.000000e+00> : vector<128xf32>
    %20 = vector.multi_reduction <add>, %19, %cst_11 [1] : vector<128x4xf32> to vector<128xf32>
    %21 = vector.shape_cast %20 : vector<128xf32> to vector<128x1xf32>
    %22 = math.log %21 : vector<128x1xf32>
    %23 = tpu.reciprocal %21 {approx = true} : vector<128x1xf32> -> vector<128x1xf32>
    %c0_12 = arith.constant 0 : index
    %c0_13 = arith.constant 0 : index
    %24 = vector.load %arg2[%c0_12, %c0_13] : memref<128x1xi32, #tpu.memory_space<vmem>>, vector<128x1xi32>
    %25 = tpu.iota {dimensions = array<i32: 1>} : vector<128x4xi32>
    %26 = vector.broadcast %24 : vector<128x1xi32> to vector<128x4xi32>
    %27 = arith.cmpi eq, %25, %26 : vector<128x4xi32>
    %cst_14 = arith.constant 0.000000e+00 : f32
    %28 = vector.broadcast %cst_14 : f32 to vector<128x4xf32>
    %29 = arith.select %27, %18, %28 : vector<128x4xi1>, vector<128x4xf32>
    %cst_15 = arith.constant dense<0.000000e+00> : vector<128xf32>
    %30 = vector.multi_reduction <add>, %29, %cst_15 [1] : vector<128x4xf32> to vector<128xf32>
    %31 = vector.shape_cast %30 : vector<128xf32> to vector<128x1xf32>
    %32 = arith.subf %31, %22 : vector<128x1xf32>
    %33 = arith.mulf %19, %18 : vector<128x4xf32>
    %cst_16 = arith.constant dense<0.000000e+00> : vector<128xf32>
    %34 = vector.multi_reduction <add>, %33, %cst_16 [1] : vector<128x4xf32> to vector<128xf32>
    %35 = vector.shape_cast %34 : vector<128xf32> to vector<128x1xf32>
    %36 = arith.mulf %35, %23 : vector<128x1xf32>
    %37 = arith.subf %22, %36 : vector<128x1xf32>
    %cst_17 = arith.constant 0.000000e+00 : f32
    %38 = vector.broadcast %cst_17 : f32 to vector<128x5xf32>
    %39 = tpu.concatenate %32, %14, %37, %38 in 1 : vector<128x1xf32>, vector<128x1xf32>, vector<128x1xf32>, vector<128x5xf32> -> vector<128x8xf32>
    %40 = tpu.transpose %39, [1, 0] : vector<128x8xf32> -> vector<8x128xf32>
    %c0_18 = arith.constant 0 : index
    %c0_19 = arith.constant 0 : index
    %41 = vector.load %arg7[%c0_18, %c0_19] : memref<8x128xf32, #tpu.memory_space<vmem>>, vector<8x128xf32>
    tpu.vector_store %arg7[%c0_18, %c0_19], %40 {strides = array<i32>} : memref<8x128xf32, #tpu.memory_space<vmem>>, vector<8x128xf32>,
    return
  }
  func.func @transform_0(%arg0: i32) -> (i32, i32) {
    %c0_i32 = arith.constant 0 : i32
    %c0_i32_0 = arith.constant 0 : i32
    return %arg0, %c0_i32 : i32, i32
  }
  func.func @transform_1(%arg0: i32) -> (i32, i32) {
    %c0_i32 = arith.constant 0 : i32
    %c0_i32_0 = arith.constant 0 : i32
    return %arg0, %c0_i32 : i32, i32
  }
  func.func @transform_2(%arg0: i32) -> (i32, i32) {
    %c0_i32 = arith.constant 0 : i32
    %c0_i32_0 = arith.constant 0 : i32
    %c0_i32_1 = arith.constant 0 : i32
    return %c0_i32, %c0_i32_0 : i32, i32
  }
  func.func @transform_3(%arg0: i32) -> (i32, i32) {
    %c0_i32 = arith.constant 0 : i32
    %c0_i32_0 = arith.constant 0 : i32
    %c0_i32_1 = arith.constant 0 : i32
    return %c0_i32, %c0_i32_0 : i32, i32
  }
  func.func @transform_4(%arg0: i32) -> (i32, i32) {
    %c0_i32 = arith.constant 0 : i32
    %c0_i32_0 = arith.constant 0 : i32
    %c0_i32_1 = arith.constant 0 : i32
    return %c0_i32, %c0_i32_0 : i32, i32
  }
  func.func @transform_5(%arg0: i32) -> (i32, i32) {
    %c0_i32 = arith.constant 0 : i32
    %c0_i32_0 = arith.constant 0 : i32
    %c0_i32_1 = arith.constant 0 : i32
    return %c0_i32, %c0_i32_0 : i32, i32
  }
  func.func @transform_6(%arg0: i32) -> (i32, i32) {
    %c0_i32 = arith.constant 0 : i32
    %c0_i32_0 = arith.constant 0 : i32
    return %c0_i32, %arg0 : i32, i32
  }
}

</mosaic_0001>

<bundles_post_ra>
// kernel: tpu_custom_call.1
= control target key start
LH: loop header
LB: loop body
LE: loop exit
PB: predicated region body
PF: predicated region fallthrough
CT: control target
= control target key end

     0   :  { %vm93_vm0 = vcmask 130048   ;;  %s1714_s0 = inlined_call_operand.vmem [shape: bf16[8,16], index: 0, kind: input, shape index: {}]   ;;  %s1715_s1 = inlined_call_operand.vmem [shape: s32[8,1], index: 1, kind: input, shape index: {}]   ;;  %s1716_s2 = inlined_call_operand.vmem [shape: bf16[16,64], index: 2, kind: input, shape index: {}]   ;;  %s1717_s3 = inlined_call_operand.vmem [shape: f32[1,64], index: 3, kind: input, shape index: {}]   ;;  %s1718_s4 = inlined_call_operand.vmem [shape: bf16[64,5], index: 4, kind: input, shape index: {}]   ;;  %s1719_s5 = inlined_call_operand.vmem [shape: f32[1,5], index: 5, kind: input, shape index: {}]   ;;  %s1720_s6 = inlined_call_operand.hbm [shape: f32[8,8], index: 6, kind: output, shape index: {}]  }
   0x1   :  { %v992_v0 = vld [vmem:[%s1716_s2] sm:$0xff] }
   0x2   :  { %v984_v1 = vld [vmem:[%s1714_s0] sm:$0xff]  ;;  %125 = vmatpush.bf16.msra.mxu0 %v992_v0  ;;  %997 = vmatpush.bf16.msra.mxu3 %v992_v0 }
   0x3   :  { %11 = vsyncpa [#allocation3], 0  ;;  %v985_v2 = vld [vmem:[%s1714_s0 + $0x8] sm:$0xff]  ;;  %v986_v3 = vld [vmem:[%s1714_s0 + $0x10] sm:$0xff]  ;;  %v1164_v18 = vmov 0   ;;  %vm227_vm1 = vcmask 523264  }
   0x4   :  { %v987_v4 = vld [vmem:[%s1714_s0 + $0x18] sm:$0xff]  ;;  %v988_v5 = vld [vmem:[%s1714_s0 + $0x20] sm:$0xff]  ;;  %v989_v7 = vld [vmem:[%s1714_s0 + $0x28] sm:$0xff]  ;;  %1005 = vset.pattern.permute.xlu2 %v1164_v18  ;;  %1007 = vset.pattern.permute.xlu1 %v1164_v18  ;;  %s1165_s27 = smov 125   ;;  %vm301_vm2 = vcmask 31744   ;;  %s907_s30 = sshll.u32 %s1720_s6, 4  ;;  %s908_s30 = int_to_ptr.hbm [resolvable:$true] %s907_s30 }
   0x5   :  { %952 = vmatmul.msk.bf16.vlgmr.msra.gmra.mxu0 %vm93_vm0, %v984_v1  ;;  %v996_v6 = vld [vmem:[%s1718_s4 + $0x18] sm:$0xff]  ;;  %957 = vmatmul.msk.bf16.vlgmr.msra.gmra.mxu3 %vm93_vm0, %v989_v7  ;;  %v995_v8 = vld [vmem:[%s1718_s4 + $0x10] sm:$0xff]  ;;  %v994_v9 = vld [vmem:[%s1718_s4 + $0x8] sm:$0xff] }
   0x6   :  { %256 = vmatpush.bf16.msra.mxu1 %v996_v6  ;;  %998 = vmatpush.bf16.msra.mxu2 %v996_v6  ;;  %v993_v10 = vld [vmem:[%s1718_s4] sm:$0xff]  ;;  %v990_v16 = vld [vmem:[%s1714_s0 + $0x30] sm:$0xff]  ;;  %v497_v23 = vld [vmem:[%s1715_s1 + $0x18] sm:$0xff] }
   0x7   :  { %v1244_v12 = vld [vmem:[%s1717_s3] ss:$0 sm:$0xff]  ;;  %1006 = vset.pattern.permute.xlu0 %v1164_v18  ;;  %v496_v28 = vld [vmem:[%s1715_s1 + $0x10] sm:$0xff]  ;;  %v495_v34 = vld [vmem:[%s1715_s1 + $0x8] sm:$0xff] }
   0x8   :  { %v494_v17 = vld [vmem:[%s1715_s1] sm:$0xff]  ;;  %519 = vperm.xlu1 %1007, %v496_v28   ;;  %v500_v33 = vld [vmem:[%s1715_s1 + $0x30] sm:$0xff]  ;;  %v499_v35 = vld [vmem:[%s1715_s1 + $0x28] sm:$0xff]  ;;  %516 = vperm.xlu0 %1006, %v495_v34  }
   0x9   :  { %513 = vperm.xlu2 %1005, %v494_v17   ;;  %v498_v27 = vld [vmem:[%s1715_s1 + $0x20] sm:$0xff]  ;;  %v991_v37 = vld [vmem:[%s1714_s0 + $0x38] sm:$0xff]  ;;  %v503_v40 = vld [vmem:[%s1715_s1 + $0x48] sm:$0xff] }
   0xa   :  { %257 = vmatpush.bf16.msra.mxu1 %v995_v8  ;;  %999 = vmatpush.bf16.msra.mxu2 %v995_v8  ;;  %v502_v41 = vld [vmem:[%s1715_s1 + $0x40] sm:$0xff]  ;;  %v501_v42 = vld [vmem:[%s1715_s1 + $0x38] sm:$0xff]  ;;  %v504_v49 = vld [vmem:[%s1715_s1 + $0x50] sm:$0xff] }
   0xb   :  { %v506_v47 = vld [vmem:[%s1715_s1 + $0x60] sm:$0xff]  ;;  %v505_v48 = vld [vmem:[%s1715_s1 + $0x58] sm:$0xff]  ;;  %v508_v54 = vld [vmem:[%s1715_s1 + $0x70] sm:$0xff] }
   0xc   :  { %v509_v53 = vld [vmem:[%s1715_s1 + $0x78] sm:$0xff]  ;;  %v507_v55 = vld [vmem:[%s1715_s1 + $0x68] sm:$0xff] }
   0xe   :  { %258 = vmatpush.bf16.msra.mxu1 %v994_v9  ;;  %1000 = vmatpush.bf16.msra.mxu2 %v994_v9  ;;  %v1323_v9 = vld [vmem:[%s1719_s5] ss:$0 sm:$0xff]  ;;  %s1166_s5 = smov [#allocation2]  }
   0xf   :  { %s905_s28 = sshll.u32 %s1166_s5, 4  ;;  %s906_s28 = int_to_ptr.vmem [resolvable:$true] %s905_s28 }
  0x10   :  { %528 = vperm.xlu1 %1007, %v499_v35   ;;  %537 = vperm.xlu0 %1006, %v502_v41  }
  0x11   :  { %522 = vperm.xlu2 %1005, %v497_v23  }
  0x12   :  { %259 = vmatpush.bf16.msra.mxu1 %v993_v10  ;;  %1001 = vmatpush.bf16.msra.mxu2 %v993_v10 }
  0x15   :  { %953 = vmatmul.msk.bf16.gmra.mxu0 %vm93_vm0, %v985_v2  ;;  %958 = vmatmul.msk.bf16.gmra.mxu3 %vm93_vm0, %v990_v16 }
  0x18   :  { %534 = vperm.xlu1 %1007, %v501_v42   ;;  %546 = vperm.xlu0 %1006, %v505_v48  }
  0x19   :  { %525 = vperm.xlu2 %1005, %v498_v27  }
  0x20   :  { %543 = vperm.xlu1 %1007, %v504_v49   ;;  %555 = vperm.xlu0 %1006, %v508_v54  }
  0x21   :  { %531 = vperm.xlu2 %1005, %v500_v33  }
  0x25   :  { %954 = vmatmul.msk.bf16.gmra.mxu0 %vm93_vm0, %v986_v3  ;;  %959 = vmatmul.msk.bf16.gmra.mxu3 %vm93_vm0, %v991_v37 }
  0x28   :  { %552 = vperm.xlu1 %1007, %v507_v55  }
  0x29   :  { %540 = vperm.xlu2 %1005, %v503_v40  }
  0x31   :  { %549 = vperm.xlu2 %1005, %v506_v47  }
  0x35   :  { %955 = vmatmul.msk.bf16.gmra.mxu0 %vm93_vm0, %v987_v4 }
  0x39   :  { %558 = vperm.xlu2 %1005, %v509_v53  }
  0x45   :  { %956 = vmatmul.msk.bf16.gmra.mxu0 %vm93_vm0, %v988_v5 }
  0x82   :  { %v127_v11 = vpop.f32.mrf.mxu0 }
  0x83   :  { %v128_v13 = vadd.f32 %v1244_v12, %v127_v11 }
  0x85   :  { %1010 = vtanh.f32 %v128_v13 }
  0x88   :  { %v152_v2 = vpop.f32.mrf.mxu3 }
  0x89   :  { %v153_v3 = vadd.f32 %v1244_v12, %v152_v2 }
  0x8a   :  { %v129_v14 = vpop.f32.mrf.mxu0 }
  0x8b   :  { %v130_v15 = vadd.f32 %v1244_v12, %v129_v14  ;;  %v1011_v19 = vpop.eup %1010 }
  0x8d   :  { %1012 = vtanh.f32 %v130_v15 }
  0x90   :  { %v154_v4 = vpop.f32.mrf.mxu3 }
  0x91   :  { %v155_v5 = vadd.f32 %v1244_v12, %v154_v4 }
  0x92   :  { %v132_v20 = vpop.f32.mrf.mxu0 }
  0x93   :  { %v1013_v21 = vpop.eup %1012  ;;  %v133_v24 = vadd.f32 %v1244_v12, %v132_v20 }
  0x94   :  { %v183_v22 = vpack.c.bf16 %v1013_v21, %v1011_v19 }
  0x95   :  { %1014 = vtanh.f32 %v133_v24 }
  0x96   :  { %976 = vmatmul.msk.bf16.vlgmr.msra.gmra.mxu1 %vm227_vm1, %v183_v22 }
  0x98   :  { %v157_v15 = vpop.f32.mrf.mxu3 }
  0x99   :  { %v158_v19 = vadd.f32 %v1244_v12, %v157_v15 }
  0x9a   :  { %v134_v25 = vpop.f32.mrf.mxu0 }
  0x9b   :  { %v135_v26 = vadd.f32 %v1244_v12, %v134_v25  ;;  %v1015_v29 = vpop.eup %1014 }
  0x9d   :  { %1016 = vtanh.f32 %v135_v26 }
  0xa0   :  { %v159_v18 = vpop.f32.mrf.mxu3 }
  0xa1   :  { %v160_v20 = vadd.f32 %v1244_v12, %v159_v18 }
  0xa2   :  { %v137_v30 = vpop.f32.mrf.mxu0 }
  0xa3   :  { %v1017_v31 = vpop.eup %1016  ;;  %v138_v36 = vadd.f32 %v1244_v12, %v137_v30 }
  0xa4   :  { %v184_v32 = vpack.c.bf16 %v1017_v31, %v1015_v29 }
  0xa5   :  { %1018 = vtanh.f32 %v138_v36 }
  0xa6   :  { %977 = vmatmul.msk.bf16.gmra.mxu1 %vm227_vm1, %v184_v32 }
  0xa8   :  { %v162_v29 = vpop.f32.mrf.mxu3 }
  0xa9   :  { %v163_v37 = vadd.f32 %v1244_v12, %v162_v29 }
  0xaa   :  { %v139_v38 = vpop.f32.mrf.mxu0 }
  0xab   :  { %v140_v39 = vadd.f32 %v1244_v12, %v139_v38  ;;  %v1019_v43 = vpop.eup %1018 }
  0xad   :  { %1020 = vtanh.f32 %v140_v39 }
  0xb0   :  { %v164_v35 = vpop.f32.mrf.mxu3 }
  0xb1   :  { %v165_v38 = vadd.f32 %v1244_v12, %v164_v35 }
  0xb2   :  { %v142_v44 = vpop.f32.mrf.mxu0 }
  0xb3   :  { %v1021_v45 = vpop.eup %1020  ;;  %v143_v50 = vadd.f32 %v1244_v12, %v142_v44 }
  0xb4   :  { %v185_v46 = vpack.c.bf16 %v1021_v45, %v1019_v43 }
  0xb5   :  { %1022 = vtanh.f32 %v143_v50 }
  0xb6   :  { %978 = vmatmul.msk.bf16.gmra.mxu1 %vm227_vm1, %v185_v46 }
  0xba   :  { %v144_v51 = vpop.f32.mrf.mxu0 }
  0xbb   :  { %v145_v52 = vadd.f32 %v1244_v12, %v144_v51  ;;  %v1023_v56 = vpop.eup %1022 }
  0xbd   :  { %1024 = vtanh.f32 %v145_v52 }
  0xc2   :  { %v147_v57 = vpop.f32.mrf.mxu0 }
  0xc3   :  { %v1025_v58 = vpop.eup %1024  ;;  %v148_v60 = vadd.f32 %v1244_v12, %v147_v57  ;;  %v517_v57 = vpop.permute.xlu0 %516 }
  0xc4   :  { %v186_v59 = vpack.c.bf16 %v1025_v58, %v1023_v56  ;;  %v1406_v56 = vpop.permute.xlu2 %513 }
  0xc5   :  { %1026 = vtanh.f32 %v148_v60  ;;  %v1411_v60 = vpop.permute.xlu1 %519 }
  0xc6   :  { %979 = vmatmul.msk.bf16.gmra.mxu1 %vm227_vm1, %v186_v59 }
  0xca   :  { %v149_v61 = vpop.f32.mrf.mxu0 }
  0xcb   :  { %v150_v62 = vadd.f32 %v1244_v12, %v149_v61  ;;  %v1027_v63 = vpop.eup %1026 }
  0xcd   :  { %1028 = vtanh.f32 %v150_v62  ;;  %v1415_v62 = vpop.permute.xlu2 %522 }
  0xce   :  { %1030 = vtanh.f32 %v153_v3 }
  0xcf   :  { %1032 = vtanh.f32 %v155_v5 }
  0xd0   :  { %1034 = vtanh.f32 %v158_v19 }
  0xd1   :  { %1036 = vtanh.f32 %v160_v20 }
  0xd2   :  { %1038 = vtanh.f32 %v163_v37 }
  0xd3   :  { %v1029_v0 = vpop.eup %1028  ;;  %1040 = vtanh.f32 %v165_v38 }
  0xd4   :  { %v187_v1 = vpack.c.bf16 %v1029_v0, %v1027_v63  ;;  %v1031_v6 = vpop.eup %1030  ;;  %v1417_v63 = vpop.permute.xlu0 %537 }
  0xd5   :  { %v1033_v7 = vpop.eup %1032  ;;  %v1425_v2 = vpop.permute.xlu2 %525 }
  0xd6   :  { %980 = vmatmul.msk.bf16.vlgmr.msra.gmra.mxu2 %vm227_vm1, %v187_v1  ;;  %v188_v8 = vpack.c.bf16 %v1033_v7, %v1031_v6  ;;  %v1035_v21 = vpop.eup %1034  ;;  %v1421_v1 = vpop.permute.xlu1 %528 }
  0xd7   :  { %v1037_v22 = vpop.eup %1036 }
  0xd8   :  { %v189_v23 = vpack.c.bf16 %v1037_v22, %v1035_v21  ;;  %v1039_v40 = vpop.eup %1038 }
  0xd9   :  { %v1041_v41 = vpop.eup %1040 }
  0xda   :  { %v190_v42 = vpack.c.bf16 %v1041_v41, %v1039_v40 }
  0xdc   :  { %v1427_v3 = vpop.permute.xlu0 %546 }
  0xdd   :  { %v1431_v6 = vpop.permute.xlu2 %531 }
  0xde   :  { %v1429_v5 = vpop.permute.xlu1 %534 }
  0xe4   :  { %v1433_v7 = vpop.permute.xlu0 %555 }
  0xe5   :  { %v1449_v18 = vpop.permute.xlu2 %540 }
  0xe6   :  { %981 = vmatmul.msk.bf16.gmra.mxu2 %vm227_vm1, %v188_v8 }
  0xed   :  { %v1453_v22 = vpop.permute.xlu2 %549 }
  0xf6   :  { %982 = vmatmul.msk.bf16.gmra.mxu2 %vm227_vm1, %v189_v23 }
 0x106   :  { %983 = vmatmul.msk.bf16.gmra.mxu2 %vm227_vm1, %v190_v42 }
 0x113   :  { %v261_v10 = vpop.f32.mrf.mxu1 }
 0x114   :  { %v1326_v11 = vadd.f32 %v1323_v9, %v261_v10 }
 0x116   :  { %768 = vrot.lane.b32.xlu0 %v1326_v11, %s1165_s27  ;;  %v302_v25 = vsel %vm301_vm2, %v1326_v11, -inf }
 0x11b   :  { %v263_v13 = vpop.f32.mrf.mxu1 }
 0x11c   :  { %v1331_v14 = vadd.f32 %v1323_v9, %v263_v13  ;;  %v1440_v13 = vpop.permute.xlu1 %543 }
 0x11e   :  { %770 = vrot.lane.b32.xlu1 %v1331_v14, %s1165_s27  ;;  %v305_v28 = vsel %vm301_vm2, %v1331_v14, -inf }
 0x123   :  { %v266_v16 = vpop.f32.mrf.mxu1 }
 0x124   :  { %v1336_v17 = vadd.f32 %v1323_v9, %v266_v16  ;;  %v1451_v19 = vpop.permute.xlu1 %552 }
 0x126   :  { %772 = vrot.lane.b32.xlu2 %v1336_v17, %s1165_s27  ;;  %v308_v27 = vsel %vm301_vm2, %v1336_v17, -inf }
 0x12b   :  { %v268_v24 = vpop.f32.mrf.mxu1 }
 0x12c   :  { %v1353_v31 = vadd.f32 %v1323_v9, %v268_v24 }
 0x12e   :  { %v311_v34 = vsel %vm301_vm2, %v1353_v31, -inf }
 0x133   :  { %v271_v26 = vpop.f32.mrf.mxu1 }
 0x134   :  { %v1350_v30 = vadd.f32 %v1323_v9, %v271_v26 }
 0x136   :  { %v314_v32 = vsel %vm301_vm2, %v1350_v30, -inf }
 0x13b   :  { %v273_v33 = vpop.f32.mrf.mxu1 }
 0x13c   :  { %v1360_v36 = vadd.f32 %v1323_v9, %v273_v33 }
 0x13e   :  { %v317_v39 = vsel %vm301_vm2, %v1360_v36, -inf }
 0x140   :  { %303 = vmax.xlane.f32.xlu0 %v302_v25 }
 0x143   :  { %v276_v43 = vpop.f32.mrf.mxu1 }
 0x144   :  { %v1374_v44 = vadd.f32 %v1323_v9, %v276_v43 }
 0x146   :  { %v320_v46 = vsel %vm301_vm2, %v1374_v44, -inf }
 0x148   :  { %309 = vmax.xlane.f32.xlu1 %v308_v27  ;;  %306 = vmax.xlane.f32.xlu0 %v305_v28 }
 0x14b   :  { %v278_v12 = vpop.f32.mrf.mxu1 }
 0x14c   :  { %v1377_v45 = vadd.f32 %v1323_v9, %v278_v12 }
 0x14e   :  { %v323_v50 = vsel %vm301_vm2, %v1377_v45, -inf }
 0x14f   :  { %315 = vmax.xlane.f32.xlu2 %v314_v32  ;;  %v1464_v32 = vpop.permute.xlu2 %558 }
 0x150   :  { %312 = vmax.xlane.f32.xlu1 %v311_v34  ;;  %v510_v34 = vlaneseq }
 0x157   :  { %318 = vmax.xlane.f32.xlu2 %v317_v39  ;;  %v1468_v39 = vand.u32 127, %v510_v34 }
 0x159   :  { %v281_v47 = vpop.f32.mrf.mxu2  ;;  %vm561_vm3 = vcmp.eq.s32.totalorder %v1468_v39, %v517_v57  ;;  %vm560_vm4 = vcmp.eq.s32.totalorder %v1468_v39, %v1406_v56  ;;  %vm562_vm5 = vcmp.eq.s32.totalorder %v1468_v39, %v1411_v60  ;;  %vm565_vm6 = vcmp.eq.s32.totalorder %v1468_v39, %v1421_v1 }
 0x15a   :  { %v1386_v48 = vadd.f32 %v1323_v9, %v281_v47  ;;  %vm563_vm7 = vcmp.eq.s32.totalorder %v1468_v39, %v1415_v62  ;;  %vm564_vm8 = vcmp.eq.s32.totalorder %v1468_v39, %v1425_v2  ;;  %vm566_vm9 = vcmp.eq.s32.totalorder %v1468_v39, %v1431_v6 }
 0x15b   :  { %vm568_vm10 = vcmp.eq.s32.totalorder %v1468_v39, %v1417_v63  ;;  %vm567_vm11 = vcmp.eq.s32.totalorder %v1468_v39, %v1429_v5  ;;  %vm571_vm12 = vcmp.eq.s32.totalorder %v1468_v39, %v1427_v3  ;;  %vm569_vm13 = vcmp.eq.s32.totalorder %v1468_v39, %v1449_v18 }
 0x15c   :  { %774 = vrot.lane.b32.xlu0 %v1353_v31, %s1165_s27  ;;  %v326_v49 = vsel %vm301_vm2, %v1386_v48, -inf  ;;  %vm570_vm14 = vcmp.eq.s32.totalorder %v1468_v39, %v1440_v13  ;;  %vm572_vm15 = vcmp.eq.s32.totalorder %v1468_v39, %v1453_v22  ;;  %vm574_vm0 = vcmp.eq.s32.totalorder %v1468_v39, %v1433_v7 }
 0x15d   :  { %vm575_vm1 = vcmp.eq.s32.totalorder %v1468_v39, %v1464_v32 }
 0x161   :  { %v283_v51 = vpop.f32.mrf.mxu2 }
 0x162   :  { %v1395_v52 = vadd.f32 %v1323_v9, %v283_v51 }
 0x164   :  { %778 = vrot.lane.b32.xlu0 %v1360_v36, %s1165_s27  ;;  %v329_v55 = vsel %vm301_vm2, %v1395_v52, -inf }
 0x169   :  { %776 = vrot.lane.b32.xlu1 %v1350_v30, %s1165_s27  ;;  %v286_v53 = vpop.f32.mrf.mxu2 }
 0x16a   :  { %v1400_v54 = vadd.f32 %v1323_v9, %v286_v53 }
 0x16c   :  { %v332_v0 = vsel %vm301_vm2, %v1400_v54, -inf }
 0x16f   :  { %780 = vrot.lane.b32.xlu2 %v1374_v44, %s1165_s27 }
 0x171   :  { %782 = vrot.lane.b32.xlu1 %v1377_v45, %s1165_s27  ;;  %v288_v58 = vpop.f32.mrf.mxu2 }
 0x172   :  { %v1409_v59 = vadd.f32 %v1323_v9, %v288_v58 }
 0x174   :  { %v335_v61 = vsel %vm301_vm2, %v1409_v59, -inf }
 0x179   :  { %v291_v4 = vpop.f32.mrf.mxu2 }
 0x17a   :  { %v1436_v8 = vadd.f32 %v1323_v9, %v291_v4 }
 0x17c   :  { %v338_v26 = vsel %vm301_vm2, %v1436_v8, -inf }
 0x181   :  { %v293_v10 = vpop.f32.mrf.mxu2 }
 0x182   :  { %v1443_v15 = vadd.f32 %v1323_v9, %v293_v10 }
 0x188   :  { %v1445_v16 = vpop.permute.xlu0 %768 }
 0x189   :  { %v296_v20 = vpop.f32.mrf.mxu2 }
 0x18e   :  { %321 = vmax.xlane.f32.xlu0 %v320_v46 }
 0x190   :  { %v1455_v23 = vpop.permute.xlu1 %770 }
 0x191   :  { %v298_v24 = vpop.f32.mrf.mxu2 }
 0x192   :  { %v1461_v28 = vadd.f32 %v1323_v9, %v298_v24 }
 0x194   :  { %v347_v37 = vsel %vm301_vm2, %v1461_v28, -inf }
 0x198   :  { %327 = vmax.xlane.f32.xlu2 %v326_v49 }
 0x19b   :  { %324 = vmax.xlane.f32.xlu1 %v323_v50 }
 0x1a2   :  { %784 = vrot.lane.b32.xlu0 %v1386_v48, %s1165_s27 }
 0x1b0   :  { %786 = vrot.lane.b32.xlu2 %v1395_v52, %s1165_s27 }
 0x1b3   :  { %v304_v21 = vpop.xlane.xlu0 %303 }
 0x1b4   :  { %788 = vrot.lane.b32.xlu1 %v1400_v54, %s1165_s27  ;;  %v350_v27 = vsub.f32 %v1326_v11, %v304_v21  ;;  %v1471_v11 = vpop.permute.xlu2 %772 }
 0x1b6   :  { %v366_v35 = vmul.f32 1.442695, %v350_v27 }
 0x1b8   :  { %1042 = vpow2.f32 %v366_v35 }
 0x1bb   :  { %v307_v25 = vpop.xlane.xlu0 %306  ;;  %v310_v33 = vpop.xlane.xlu1 %309 }
 0x1bc   :  { %v351_v29 = vsub.f32 %v1331_v14, %v307_v25  ;;  %v1474_v14 = vadd.f32 %v1323_v9, %v296_v20  ;;  %v1477_v42 = vsub.f32 %v1336_v17, %v310_v33  ;;  %v341_v17 = vsel %vm301_vm2, %v1443_v15, -inf }
 0x1be   :  { %v368_v38 = vmul.f32 1.442695, %v351_v29  ;;  %v577_v40 = vsel %vm561_vm3, %v351_v29, 0.0  ;;  %v1043_v43 = vpop.eup %1042  ;;  %v344_v12 = vsel %vm301_vm2, %v1474_v14, -inf  ;;  %v370_v49 = vmul.f32 1.442695, %v1477_v42 }
 0x1bf   :  { %v595_v46 = vsel %vm301_vm2, %v577_v40, 0.0  ;;  %v656_v51 = vmul.f32 %v1043_v43, %v350_v27  ;;  %vm573_vm3 = vcmp.eq.s32.totalorder %v1468_v39, %v1451_v19 }
 0x1c0   :  { %1044 = vpow2.f32 %v368_v38 }
 0x1c1   :  { %1046 = vpow2.f32 %v370_v49 }
 0x1c2   :  { %v316_v50 = vpop.xlane.xlu2 %315 }
 0x1c3   :  { %v313_v41 = vpop.xlane.xlu1 %312  ;;  %v354_v58 = vsub.f32 %v1350_v30, %v316_v50 }
 0x1c4   :  { %v353_v30 = vsub.f32 %v1353_v31, %v313_v41 }
 0x1c5   :  { %v374_v10 = vmul.f32 1.442695, %v354_v58  ;;  %v580_v41 = vsel %vm564_vm8, %v354_v58, 0.0 }
 0x1c6   :  { %v1045_v47 = vpop.eup %1044  ;;  %v372_v33 = vmul.f32 1.442695, %v353_v30  ;;  %v579_v38 = vsel %vm563_vm7, %v353_v30, 0.0 }
 0x1c7   :  { %v657_v9 = vmul.f32 %v1045_v47, %v351_v29  ;;  %v401_v25 = vsel %vm301_vm2, %v1045_v47, 0.0  ;;  %1048 = vpow2.f32 %v374_v10  ;;  %v604_v47 = vsel %vm301_vm2, %v580_v41, 0.0 }
 0x1c8   :  { %1050 = vpow2.f32 %v372_v33 }
 0x1c9   :  { %v675_v57 = vsel %vm301_vm2, %v657_v9, 0.0 }
 0x1ca   :  { %v319_v4 = vpop.xlane.xlu2 %318 }
 0x1cc   :  { %330 = vmax.xlane.f32.xlu0 %v329_v55  ;;  %v672_v55 = vsel %vm301_vm2, %v656_v51, 0.0 }
 0x1ce   :  { %v1507_v29 = vpop.permute.xlu0 %774 }
 0x1d2   :  { %v1524_v2 = vpop.permute.xlu2 %780 }
 0x1d9   :  { %336 = vmax.xlane.f32.xlu2 %v335_v61  ;;  %v576_v61 = vsel %vm560_vm4, %v350_v27, 0.0  ;;  %v578_v27 = vsel %vm562_vm5, %v1477_v42, 0.0  ;;  %vm833_vm4 = vcmask 15360   ;;  %vm850_vm5 = vcmask 23552  }
 0x1da   :  { %v592_v20 = vsel %vm301_vm2, %v576_v61, 0.0  ;;  %v598_v31 = vsel %vm301_vm2, %v578_v27, 0.0 }
 0x1db   :  { %v1483_v53 = vpop.permute.xlu1 %776 }
 0x1de   :  { %333 = vmax.xlane.f32.xlu1 %v332_v0  ;;  %v1047_v0 = vpop.eup %1046 }
 0x1df   :  { %v404_v24 = vsel %vm301_vm2, %v1047_v0, 0.0 }
 0x1e0   :  { %790 = vrot.lane.b32.xlu0 %v1409_v59, %s1165_s27 }
 0x1e3   :  { %v1493_v21 = vpop.permute.xlu1 %782 }
 0x1f1   :  { %792 = vrot.lane.b32.xlu2 %v1436_v8, %s1165_s27 }
 0x1f7   :  { %794 = vrot.lane.b32.xlu1 %v1443_v15, %s1165_s27 }
 0x20a   :  { %339 = vmax.xlane.f32.xlu0 %v338_v26  ;;  %v1498_v26 = vsub.f32 %v1360_v36, %v319_v4  ;;  %v398_v36 = vsel %vm301_vm2, %v1043_v43, 0.0 }
 0x20b   :  { %v328_v4 = vpop.xlane.xlu2 %327 }
 0x20c   :  { %v581_v56 = vsel %vm565_vm6, %v1498_v26, 0.0  ;;  %v376_v60 = vmul.f32 1.442695, %v1498_v26 }
 0x20d   :  { %v607_v35 = vsel %vm301_vm2, %v581_v56, 0.0 }
 0x20e   :  { %v325_v34 = vpop.xlane.xlu1 %324  ;;  %1052 = vpow2.f32 %v376_v60 }
 0x20f   :  { %v357_v1 = vsub.f32 %v1377_v45, %v325_v34  ;;  %v658_v45 = vmul.f32 %v1047_v0, %v1477_v42  ;;  %v1531_v0 = vsub.f32 %v1386_v48, %v328_v4 }
 0x211   :  { %v380_v43 = vmul.f32 1.442695, %v357_v1  ;;  %v678_v9 = vsel %vm301_vm2, %v658_v45, 0.0  ;;  %v584_v56 = vsel %vm568_vm10, %v1531_v0, 0.0  ;;  %v583_v27 = vsel %vm567_vm11, %v357_v1, 0.0 }
 0x212   :  { %348 = vmax.xlane.f32.xlu0 %v347_v37  ;;  %v1049_v37 = vpop.eup %1048  ;;  %v613_v63 = vsel %vm301_vm2, %v583_v27, 0.0 }
 0x213   :  { %v660_v40 = vmul.f32 %v1049_v37, %v354_v58  ;;  %v1051_v49 = vpop.eup %1050  ;;  %1054 = vpow2.f32 %v380_v43  ;;  %v1546_v33 = vpop.permute.xlu2 %786 }
 0x214   :  { %v659_v50 = vmul.f32 %v1051_v49, %v353_v30  ;;  %v1053_v51 = vpop.eup %1052  ;;  %v410_v30 = vsel %vm301_vm2, %v1049_v37, 0.0 }
 0x215   :  { %v684_v62 = vsel %vm301_vm2, %v660_v40, 0.0  ;;  %v661_v37 = vmul.f32 %v1053_v51, %v1498_v26 }
 0x217   :  { %v687_v41 = vsel %vm301_vm2, %v661_v37, 0.0 }
 0x219   :  { %v1055_v58 = vpop.eup %1054 }
 0x21a   :  { %345 = vmax.xlane.f32.xlu2 %v344_v12  ;;  %596 = vadd.xlane.f32.xlu0 %v595_v46  ;;  %v601_v12 = vsel %vm301_vm2, %v579_v38, 0.0  ;;  %v1519_v46 = vpop.permute.xlu0 %778  ;;  %v663_v10 = vmul.f32 %v1055_v58, %v357_v1 }
 0x221   :  { %342 = vmax.xlane.f32.xlu1 %v341_v17 }
 0x222   :  { %673 = vadd.xlane.f32.xlu2 %v672_v55  ;;  %676 = vadd.xlane.f32.xlu0 %v675_v57  ;;  %v322_v17 = vpop.xlane.xlu0 %321  ;;  %v413_v55 = vsel %vm301_vm2, %v1053_v51, 0.0  ;;  %v681_v57 = vsel %vm301_vm2, %v659_v50, 0.0  ;;  %v419_v51 = vsel %vm301_vm2, %v1055_v58, 0.0 }
 0x223   :  { %v356_v61 = vsub.f32 %v1374_v44, %v322_v17  ;;  %v382_v44 = vmul.f32 1.442695, %v1531_v0 }
 0x225   :  { %v378_v42 = vmul.f32 1.442695, %v356_v61  ;;  %v582_v48 = vsel %vm566_vm9, %v356_v61, 0.0 }
 0x227   :  { %1056 = vpow2.f32 %v378_v42 }
 0x228   :  { %1058 = vpow2.f32 %v382_v44 }
 0x229   :  { %593 = vadd.xlane.f32.xlu1 %v592_v20  ;;  %v407_v20 = vsel %vm301_vm2, %v1051_v49, 0.0 }
 0x22a   :  { %405 = vadd.xlane.f32.xlu0 %v404_v24  ;;  %402 = vadd.xlane.f32.xlu2 %v401_v25  ;;  %v1534_v24 = vpop.permute.xlu1 %788  ;;  %v693_v25 = vsel %vm301_vm2, %v663_v10, 0.0  ;;  %v1549_v34 = vpop.permute.xlu0 %784 }
 0x231   :  { %399 = vadd.xlane.f32.xlu1 %v398_v36  ;;  %v610_v36 = vsel %vm301_vm2, %v582_v48, 0.0 }
 0x232   :  { %608 = vadd.xlane.f32.xlu0 %v607_v35  ;;  %599 = vadd.xlane.f32.xlu2 %v598_v31  ;;  %v616_v35 = vsel %vm301_vm2, %v584_v56, 0.0  ;;  %v1057_v31 = vpop.eup %1056 }
 0x233   :  { %v662_v60 = vmul.f32 %v1057_v31, %v356_v61  ;;  %v1059_v1 = vpop.eup %1058  ;;  %v416_v45 = vsel %vm301_vm2, %v1057_v31, 0.0 }
 0x234   :  { %v664_v18 = vmul.f32 %v1059_v1, %v1531_v0 }
 0x236   :  { %v696_v13 = vsel %vm301_vm2, %v664_v18, 0.0 }
 0x239   :  { %602 = vadd.xlane.f32.xlu1 %v601_v12  ;;  %v422_v12 = vsel %vm301_vm2, %v1059_v1, 0.0 }
 0x23a   :  { %685 = vadd.xlane.f32.xlu0 %v684_v62  ;;  %605 = vadd.xlane.f32.xlu2 %v604_v47  ;;  %v690_v62 = vsel %vm301_vm2, %v662_v60, 0.0 }
 0x23f   :  { %v331_v43 = vpop.xlane.xlu0 %330 }
 0x241   :  { %679 = vadd.xlane.f32.xlu1 %v678_v9 }
 0x242   :  { %414 = vadd.xlane.f32.xlu0 %v413_v55  ;;  %682 = vadd.xlane.f32.xlu2 %v681_v57 }
 0x249   :  { %408 = vadd.xlane.f32.xlu1 %v407_v20 }
 0x24a   :  { %694 = vadd.xlane.f32.xlu0 %v693_v25  ;;  %411 = vadd.xlane.f32.xlu2 %v410_v30 }
 0x24c   :  { %v337_v38 = vpop.xlane.xlu2 %336 }
 0x24d   :  { %v361_v47 = vsub.f32 %v1409_v59, %v337_v38 }
 0x24f   :  { %v587_v26 = vsel %vm571_vm12, %v361_v47, 0.0 }
 0x250   :  { %v625_v50 = vsel %vm301_vm2, %v587_v26, 0.0 }
 0x251   :  { %v334_v6 = vpop.xlane.xlu1 %333  ;;  %611 = vadd.xlane.f32.xlu1 %v610_v36 }
 0x252   :  { %617 = vadd.xlane.f32.xlu0 %v616_v35  ;;  %614 = vadd.xlane.f32.xlu2 %v613_v63  ;;  %v360_v5 = vsub.f32 %v1400_v54, %v334_v6  ;;  %v359_v54 = vsub.f32 %v1395_v52, %v331_v43  ;;  %v388_v52 = vmul.f32 1.442695, %v361_v47  ;;  %v1576_v25 = vpop.permute.xlu0 %790 }
 0x254   :  { %v386_v40 = vmul.f32 1.442695, %v360_v5  ;;  %v384_v49 = vmul.f32 1.442695, %v359_v54  ;;  %v585_v59 = vsel %vm569_vm13, %v359_v54, 0.0  ;;  %v586_v17 = vsel %vm570_vm14, %v360_v5, 0.0  ;;  %v1584_v6 = vpop.permute.xlu2 %792 }
 0x255   :  { %v619_v55 = vsel %vm301_vm2, %v585_v59, 0.0  ;;  %v622_v58 = vsel %vm301_vm2, %v586_v17, 0.0 }
 0x256   :  { %1060 = vpow2.f32 %v386_v40 }
 0x257   :  { %1062 = vpow2.f32 %v384_v49 }
 0x258   :  { %1064 = vpow2.f32 %v388_v52 }
 0x259   :  { %688 = vadd.xlane.f32.xlu1 %v687_v41 }
 0x25a   :  { %423 = vadd.xlane.f32.xlu0 %v422_v12  ;;  %691 = vadd.xlane.f32.xlu2 %v690_v62 }
 0x25c   :  { %v1061_v9 = vpop.eup %1060 }
 0x25d   :  { %v666_v3 = vmul.f32 %v1061_v9, %v360_v5  ;;  %v1063_v61 = vpop.eup %1062  ;;  %v428_v44 = vsel %vm301_vm2, %v1061_v9, 0.0 }
 0x25e   :  { %v665_v4 = vmul.f32 %v1063_v61, %v359_v54  ;;  %v1065_v10 = vpop.eup %1064  ;;  %v425_v30 = vsel %vm301_vm2, %v1063_v61, 0.0 }
 0x25f   :  { %v702_v57 = vsel %vm301_vm2, %v666_v3, 0.0  ;;  %v431_v42 = vsel %vm301_vm2, %v1065_v10, 0.0  ;;  %v667_v35 = vmul.f32 %v1065_v10, %v361_v47 }
 0x260   :  { %v699_v20 = vsel %vm301_vm2, %v665_v4, 0.0 }
 0x261   :  { %417 = vadd.xlane.f32.xlu1 %v416_v45  ;;  %v705_v63 = vsel %vm301_vm2, %v667_v35, 0.0 }
 0x262   :  { %626 = vadd.xlane.f32.xlu0 %v625_v50  ;;  %420 = vadd.xlane.f32.xlu2 %v419_v51 }
 0x269   :  { %620 = vadd.xlane.f32.xlu1 %v619_v55  ;;  %v1587_v31 = vpop.permute.xlu1 %794 }
 0x26a   :  { %703 = vadd.xlane.f32.xlu0 %v702_v57  ;;  %623 = vadd.xlane.f32.xlu2 %v622_v58 }
 0x271   :  { %697 = vadd.xlane.f32.xlu1 %v696_v13 }
 0x272   :  { %432 = vadd.xlane.f32.xlu0 %v431_v42  ;;  %700 = vadd.xlane.f32.xlu2 %v699_v20 }
 0x279   :  { %426 = vadd.xlane.f32.xlu1 %v425_v30 }
 0x27a   :  { %429 = vadd.xlane.f32.xlu2 %v428_v44 }
 0x27d   :  { %v340_v0 = vpop.xlane.xlu0 %339 }
 0x27e   :  { %v362_v48 = vsub.f32 %v1436_v8, %v340_v0 }
 0x280   :  { %v588_v56 = vsel %vm572_vm15, %v362_v48, 0.0  ;;  %v390_v36 = vmul.f32 1.442695, %v362_v48 }
 0x281   :  { %v628_v27 = vsel %vm301_vm2, %v588_v56, 0.0 }
 0x282   :  { %629 = vadd.xlane.f32.xlu1 %v628_v27  ;;  %1066 = vpow2.f32 %v390_v36 }
 0x285   :  { %v349_v22 = vpop.xlane.xlu0 %348 }
 0x286   :  { %v365_v41 = vsub.f32 %v1461_v28, %v349_v22 }
 0x288   :  { %v1067_v37 = vpop.eup %1066  ;;  %v591_v7 = vsel %vm575_vm1, %v365_v41, 0.0  ;;  %v396_v45 = vmul.f32 1.442695, %v365_v41 }
 0x289   :  { %v434_v40 = vsel %vm301_vm2, %v1067_v37, 0.0  ;;  %v637_v26 = vsel %vm301_vm2, %v591_v7, 0.0  ;;  %v668_v50 = vmul.f32 %v1067_v37, %v362_v48 }
 0x28a   :  { %706 = vadd.xlane.f32.xlu1 %v705_v63 }
 0x28d   :  { %v346_v5 = vpop.xlane.xlu2 %345  ;;  %v597_v10 = vpop.xlane.xlu0 %596 }
 0x28e   :  { %v364_v8 = vsub.f32 %v1474_v14, %v346_v5 }
 0x290   :  { %v394_v60 = vmul.f32 1.442695, %v364_v8  ;;  %v590_v1 = vsel %vm574_vm0, %v364_v8, 0.0 }
 0x291   :  { %v634_v38 = vsel %vm301_vm2, %v590_v1, 0.0 }
 0x292   :  { %635 = vadd.xlane.f32.xlu0 %v634_v38  ;;  %435 = vadd.xlane.f32.xlu1 %v434_v40  ;;  %1068 = vpow2.f32 %v394_v60 }
 0x294   :  { %v343_v43 = vpop.xlane.xlu1 %342 }
 0x295   :  { %v363_v12 = vsub.f32 %v1443_v15, %v343_v43  ;;  %v708_v15 = vsel %vm301_vm2, %v668_v50, 0.0  ;;  %v674_v3 = vpop.xlane.xlu2 %673  ;;  %v677_v20 = vpop.xlane.xlu0 %676 }
 0x297   :  { %v392_v62 = vmul.f32 1.442695, %v363_v12  ;;  %v589_v47 = vsel %vm573_vm3, %v363_v12, 0.0 }
 0x298   :  { %v631_v54 = vsel %vm301_vm2, %v589_v47, 0.0  ;;  %v1069_v49 = vpop.eup %1068 }
 0x299   :  { %1070 = vpow2.f32 %v392_v62  ;;  %632 = vadd.xlane.f32.xlu2 %v631_v54  ;;  %v670_v51 = vmul.f32 %v1069_v49, %v364_v8  ;;  %v440_v57 = vsel %vm301_vm2, %v1069_v49, 0.0 }
 0x29a   :  { %638 = vadd.xlane.f32.xlu1 %v637_v26  ;;  %1072 = vpow2.f32 %v396_v45 }
 0x29b   :  { %v714_v19 = vsel %vm301_vm2, %v670_v51, 0.0 }
 0x29c   :  { %v594_v52 = vpop.xlane.xlu1 %593 }
 0x29d   :  { %v403_v4 = vpop.xlane.xlu2 %402  ;;  %v406_v0 = vpop.xlane.xlu0 %405 }
 0x29f   :  { %v1071_v32 = vpop.eup %1070 }
 0x2a0   :  { %v669_v9 = vmul.f32 %v1071_v32, %v363_v12  ;;  %v1073_v59 = vpop.eup %1072  ;;  %v437_v17 = vsel %vm301_vm2, %v1071_v32, 0.0 }
 0x2a1   :  { %709 = vadd.xlane.f32.xlu2 %v708_v15  ;;  %v443_v55 = vsel %vm301_vm2, %v1073_v59, 0.0  ;;  %v671_v58 = vmul.f32 %v1073_v59, %v365_v41 }
 0x2a2   :  { %715 = vadd.xlane.f32.xlu1 %v714_v19  ;;  %v711_v39 = vsel %vm301_vm2, %v669_v9, 0.0 }
 0x2a3   :  { %712 = vadd.xlane.f32.xlu0 %v711_v39  ;;  %v717_v18 = vsel %vm301_vm2, %v671_v58, 0.0  ;;  %vm816_vm2 = vcmask 7168  }
 0x2a4   :  { %v400_v61 = vpop.xlane.xlu1 %399 }
 0x2a5   :  { %v600_v42 = vpop.xlane.xlu2 %599  ;;  %1074 = vlog2.f32 %v400_v61  ;;  %v1617_v27 = vpop.xlane.xlu0 %608 }
 0x2a6   :  { %1076 = vrcp.f32 %v400_v61 }
 0x2a7   :  { %1078 = vlog2.f32 %v403_v4 }
 0x2a8   :  { %1080 = vrcp.f32 %v403_v4 }
 0x2a9   :  { %438 = vadd.xlane.f32.xlu2 %v437_v17  ;;  %1082 = vlog2.f32 %v406_v0 }
 0x2aa   :  { %444 = vadd.xlane.f32.xlu1 %v443_v55  ;;  %1084 = vrcp.f32 %v406_v0 }
 0x2ab   :  { %441 = vadd.xlane.f32.xlu0 %v440_v57  ;;  %v1075_v36 = vpop.eup %1074 }
 0x2ac   :  { %v1609_v13 = vpop.xlane.xlu1 %602  ;;  %v1077_v35 = vpop.eup %1076  ;;  %v447_v63 = vmul.f32 0.6931472, %v1075_v36 }
 0x2ad   :  { %v1613_v44 = vpop.xlane.xlu2 %605  ;;  %v1079_v22 = vpop.eup %1078 }
 0x2ae   :  { %v640_v37 = vsub.f32 %v594_v52, %v447_v63  ;;  %v686_v60 = vpop.xlane.xlu0 %685  ;;  %v449_v38 = vmul.f32 0.6931472, %v1079_v22 }
 0x2b0   :  { %v817_v40 = vsel %vm816_vm2, %v640_v37, %v1445_v16  ;;  %v641_v7 = vsub.f32 %v597_v10, %v449_v38 }
 0x2b1   :  { %718 = vadd.xlane.f32.xlu2 %v717_v18 }
 0x2b2   :  { %v818_v16 = vsel %vm816_vm2, %v641_v7, %v1455_v23 }
 0x2b4   :  { %v680_v30 = vpop.xlane.xlu1 %679 }
 0x2b5   :  { %v683_v56 = vpop.xlane.xlu2 %682 }
 0x2b6   :  { %v415_v49 = vpop.xlane.xlu0 %414 }
 0x2bc   :  { %v409_v48 = vpop.xlane.xlu1 %408 }
 0x2bd   :  { %v412_v8 = vpop.xlane.xlu2 %411  ;;  %1086 = vlog2.f32 %v409_v48 }
 0x2be   :  { %1088 = vrcp.f32 %v409_v48  ;;  %v695_v55 = vpop.xlane.xlu0 %694 }
 0x2bf   :  { %796 = vrot.lane.b32.xlu0 %v1474_v14, %s1165_s27  ;;  %v720_v14 = vmul.f32 %v1077_v35, %v674_v3  ;;  %1090 = vlog2.f32 %v412_v8 }
 0x2c0   :  { %1092 = vrcp.f32 %v412_v8 }
 0x2c1   :  { %v736_v1 = vsub.f32 %v447_v63, %v720_v14  ;;  %1094 = vlog2.f32 %v415_v49 }
 0x2c2   :  { %1096 = vrcp.f32 %v415_v49 }
 0x2c3   :  { %v834_v12 = vsel %vm833_vm4, %v817_v40, %v736_v1 }
 0x2c4   :  { %v1619_v5 = vpop.xlane.xlu1 %611  ;;  %v851_v47 = vsel %vm850_vm5, %v834_v12, 0.0 }
 0x2c5   :  { %v1624_v62 = vpop.xlane.xlu2 %614 }
 0x2c6   :  { %v1642_v36 = vpop.xlane.xlu0 %617 }
 0x2c9   :  { %798 = vrot.lane.b32.xlu2 %v1461_v28, %s1165_s27  ;;  %v1081_v28 = vpop.eup %1080 }
 0x2ca   :  { %v721_v43 = vmul.f32 %v1081_v28, %v677_v20  ;;  %v1083_v54 = vpop.eup %1082 }
 0x2cb   :  { %v1085_v45 = vpop.eup %1084  ;;  %v451_v50 = vmul.f32 0.6931472, %v1083_v54 }
 0x2cc   :  { %v689_v41 = vpop.xlane.xlu1 %688  ;;  %v737_v26 = vsub.f32 %v449_v38, %v721_v43  ;;  %v722_v51 = vmul.f32 %v1085_v45, %v680_v30  ;;  %v1087_v9 = vpop.eup %1086 }
 0x2cd   :  { %v642_v19 = vsub.f32 %v600_v42, %v451_v50  ;;  %v1089_v59 = vpop.eup %1088  ;;  %v453_v3 = vmul.f32 0.6931472, %v1087_v9  ;;  %v692_v17 = vpop.xlane.xlu2 %691 }
 0x2ce   :  { %v835_v32 = vsel %vm833_vm4, %v818_v16, %v737_v26  ;;  %v738_v52 = vsub.f32 %v451_v50, %v722_v51  ;;  %v723_v57 = vmul.f32 %v1089_v59, %v683_v56  ;;  %v1091_v18 = vpop.eup %1090  ;;  %v424_v40 = vpop.xlane.xlu0 %423 }
 0x2cf   :  { %v852_v39 = vsel %vm850_vm5, %v835_v32, 0.0  ;;  %v819_v23 = vsel %vm816_vm2, %v642_v19, %v1471_v11  ;;  %v643_v61 = vsub.f32 %v1609_v13, %v453_v3  ;;  %v1093_v20 = vpop.eup %1092  ;;  %v455_v30 = vmul.f32 0.6931472, %v1091_v18 }
 0x2d0   :  { %v836_v58 = vsel %vm833_vm4, %v819_v23, %v738_v52  ;;  %v739_v42 = vsub.f32 %v453_v3, %v723_v57  ;;  %v724_v48 = vmul.f32 %v1093_v20, %v686_v60  ;;  %v1095_v63 = vpop.eup %1094 }
 0x2d1   :  { %v853_v10 = vsel %vm850_vm5, %v836_v58, 0.0  ;;  %v820_v0 = vsel %vm816_vm2, %v643_v61, %v1507_v29  ;;  %v644_v13 = vsub.f32 %v1613_v44, %v455_v30  ;;  %v1097_v8 = vpop.eup %1096  ;;  %v457_v22 = vmul.f32 0.6931472, %v1095_v63 }
 0x2d2   :  { %v837_v56 = vsel %vm833_vm4, %v820_v0, %v739_v42  ;;  %v740_v14 = vsub.f32 %v455_v30, %v724_v48  ;;  %v725_v60 = vmul.f32 %v1097_v8, %v689_v41 }
 0x2d3   :  { %v854_v35 = vsel %vm850_vm5, %v837_v56, 0.0  ;;  %v821_v29 = vsel %vm816_vm2, %v644_v13, %v1483_v53  ;;  %v645_v38 = vsub.f32 %v1617_v27, %v457_v22 }
 0x2d4   :  { %v418_v15 = vpop.xlane.xlu1 %417  ;;  %v838_v1 = vsel %vm833_vm4, %v821_v29, %v740_v14  ;;  %v741_v12 = vsub.f32 %v457_v22, %v725_v60 }
 0x2d5   :  { %v421_v11 = vpop.xlane.xlu2 %420  ;;  %1098 = vlog2.f32 %v418_v15  ;;  %v855_v43 = vsel %vm850_vm5, %v838_v1, 0.0  ;;  %v822_v41 = vsel %vm816_vm2, %v645_v38, %v1519_v46 }
 0x2d6   :  { %1100 = vrcp.f32 %v418_v15  ;;  %v839_v26 = vsel %vm833_vm4, %v822_v41, %v741_v12  ;;  %v1657_v15 = vpop.xlane.xlu0 %626 }
 0x2d7   :  { %1102 = vlog2.f32 %v421_v11  ;;  %v856_v45 = vsel %vm850_vm5, %v839_v26, 0.0 }
 0x2d8   :  { %1104 = vrcp.f32 %v421_v11 }
 0x2d9   :  { %1106 = vlog2.f32 %v424_v40 }
 0x2da   :  { %1108 = vrcp.f32 %v424_v40 }
 0x2db   :  { %v1099_v44 = vpop.eup %1098 }
 0x2dc   :  { %v1635_v4 = vpop.xlane.xlu1 %620  ;;  %v1101_v7 = vpop.eup %1100 }
 0x2dd   :  { %v1648_v28 = vpop.xlane.xlu2 %623  ;;  %v726_v54 = vmul.f32 %v1101_v7, %v692_v17  ;;  %v1103_v16 = vpop.eup %1102 }
 0x2de   :  { %v1105_v51 = vpop.eup %1104  ;;  %v461_v32 = vmul.f32 0.6931472, %v1103_v16 }
 0x2df   :  { %v727_v46 = vmul.f32 %v1105_v51, %v695_v55  ;;  %v1107_v59 = vpop.eup %1106  ;;  %v704_v55 = vpop.xlane.xlu0 %703 }
 0x2e0   :  { %v463_v57 = vmul.f32 0.6931472, %v1107_v59 }
 0x2e1   :  { %v743_v3 = vsub.f32 %v461_v32, %v727_v46 }
 0x2e2   :  { %v648_v18 = vsub.f32 %v1642_v36, %v463_v57 }
 0x2e4   :  { %867 = vxpose.xlu1.b32.start [1/16] (narrow) %v851_v47, 8  ;;  %v698_v37 = vpop.xlane.xlu1 %697  ;;  %v459_v47 = vmul.f32 0.6931472, %v1099_v44 }
 0x2e5   :  { %v701_v27 = vpop.xlane.xlu2 %700 }
 0x2e6   :  { %v646_v49 = vsub.f32 %v1619_v5, %v459_v47  ;;  %v742_v50 = vsub.f32 %v459_v47, %v726_v54  ;;  %v647_v5 = vsub.f32 %v1624_v62, %v461_v32 }
 0x2e7   :  { %v433_v13 = vpop.xlane.xlu0 %432 }
 0x2e8   :  { %v823_v9 = vsel %vm816_vm2, %v646_v49, %v1524_v2  ;;  %v824_v23 = vsel %vm816_vm2, %v647_v5, %v1493_v21  ;;  %v1109_v2 = vpop.eup %1108  ;;  %v825_v21 = vsel %vm816_vm2, %v648_v18, %v1549_v34 }
 0x2e9   :  { %v840_v19 = vsel %vm833_vm4, %v823_v9, %v742_v50  ;;  %v728_v58 = vmul.f32 %v1109_v2, %v698_v37  ;;  %v841_v61 = vsel %vm833_vm4, %v824_v23, %v743_v3 }
 0x2ea   :  { %v857_v52 = vsel %vm850_vm5, %v840_v19, 0.0  ;;  %v858_v42 = vsel %vm850_vm5, %v841_v61, 0.0 }
 0x2eb   :  { %v744_v20 = vsub.f32 %v463_v57, %v728_v58 }
 0x2ec   :  { %868 = vxpose.xlu1.b32.cont [2/16] (narrow) %v852_v39, 8  ;;  %v427_v53 = vpop.xlane.xlu1 %426 }
 0x2ed   :  { %1110 = vlog2.f32 %v427_v53  ;;  %v430_v17 = vpop.xlane.xlu2 %429  ;;  %v842_v56 = vsel %vm833_vm4, %v825_v21, %v744_v20 }
 0x2ee   :  { %1112 = vrcp.f32 %v427_v53  ;;  %v859_v63 = vsel %vm850_vm5, %v842_v56, 0.0 }
 0x2ef   :  { %1114 = vlog2.f32 %v430_v17 }
 0x2f0   :  { %1116 = vrcp.f32 %v430_v17 }
 0x2f1   :  { %1118 = vlog2.f32 %v433_v13 }
 0x2f2   :  { %1120 = vrcp.f32 %v433_v13 }
 0x2f3   :  { %v1111_v62 = vpop.eup %1110 }
 0x2f4   :  { %869 = vxpose.xlu1.b32.cont [3/16] (narrow) %v853_v10, 8  ;;  %v1113_v30 = vpop.eup %1112  ;;  %v465_v0 = vmul.f32 0.6931472, %v1111_v62 }
 0x2f5   :  { %v1663_v39 = vpop.xlane.xlu1 %629  ;;  %v729_v48 = vmul.f32 %v1113_v30, %v701_v27 }
 0x2f6   :  { %v649_v36 = vsub.f32 %v1635_v4, %v465_v0 }
 0x2f7   :  { %v745_v14 = vsub.f32 %v465_v0, %v729_v48 }
 0x2f8   :  { %v826_v22 = vsel %vm816_vm2, %v649_v36, %v1546_v33 }
 0x2f9   :  { %v843_v1 = vsel %vm833_vm4, %v826_v22, %v745_v14 }
 0x2fa   :  { %v860_v38 = vsel %vm850_vm5, %v843_v1, 0.0 }
 0x2fc   :  { %870 = vxpose.xlu1.b32.cont [4/16] (narrow) %v854_v35, 8  ;;  %v1115_v35 = vpop.eup %1114 }
 0x2fd   :  { %v707_v10 = vpop.xlane.xlu1 %706  ;;  %v1117_v37 = vpop.eup %1116  ;;  %v467_v29 = vmul.f32 0.6931472, %v1115_v35 }
 0x2fe   :  { %v730_v34 = vmul.f32 %v1117_v37, %v704_v55  ;;  %v1119_v40 = vpop.eup %1118 }
 0x2ff   :  { %v650_v44 = vsub.f32 %v1648_v28, %v467_v29  ;;  %v1121_v7 = vpop.eup %1120  ;;  %v469_v33 = vmul.f32 0.6931472, %v1119_v40 }
 0x300   :  { %v731_v53 = vmul.f32 %v1121_v7, %v707_v10 }
 0x301   :  { %v827_v12 = vsel %vm816_vm2, %v650_v44, %v1534_v24  ;;  %v651_v26 = vsub.f32 %v1657_v15, %v469_v33 }
 0x302   :  { %v747_v27 = vsub.f32 %v469_v33, %v731_v53 }
 0x303   :  { %v828_v50 = vsel %vm816_vm2, %v651_v26, %v1576_v25 }
 0x304   :  { %871 = vxpose.xlu1.b32.cont [5/16] (narrow) %v855_v43, 8  ;;  %v746_v43 = vsub.f32 %v467_v29, %v730_v34  ;;  %v845_v32 = vsel %vm833_vm4, %v828_v50, %v747_v27 }
 0x305   :  { %v436_v8 = vpop.xlane.xlu1 %435  ;;  %v636_v4 = vpop.xlane.xlu0 %635  ;;  %v862_v5 = vsel %vm850_vm5, %v845_v32, 0.0 }
 0x306   :  { %1122 = vlog2.f32 %v436_v8  ;;  %v844_v41 = vsel %vm833_vm4, %v827_v12, %v746_v43 }
 0x307   :  { %1124 = vrcp.f32 %v436_v8  ;;  %v861_v49 = vsel %vm850_vm5, %v844_v41, 0.0 }
 0x30c   :  { %872 = vxpose.xlu1.b32.cont [6/16] (narrow) %v856_v45, 8  ;;  %v1671_v11 = vpop.xlane.xlu2 %632  ;;  %v1123_v16 = vpop.eup %1122 }
 0x30d   :  { %v1685_v47 = vpop.xlane.xlu1 %638  ;;  %v1125_v24 = vpop.eup %1124  ;;  %v471_v45 = vmul.f32 0.6931472, %v1123_v16 }
 0x30f   :  { %v652_v19 = vsub.f32 %v1663_v39, %v471_v45 }
 0x311   :  { %v829_v17 = vsel %vm816_vm2, %v652_v19, %v1584_v6 }
 0x314   :  { %873 = vxpose.xlu1.b32.cont [7/16] (narrow) %v857_v52, 8  ;;  %v710_v60 = vpop.xlane.xlu2 %709 }
 0x315   :  { %v732_v51 = vmul.f32 %v1125_v24, %v710_v60  ;;  %v716_v9 = vpop.xlane.xlu1 %715 }
 0x316   :  { %v713_v54 = vpop.xlane.xlu0 %712 }
 0x317   :  { %v748_v52 = vsub.f32 %v471_v45, %v732_v51 }
 0x319   :  { %v846_v25 = vsel %vm833_vm4, %v829_v17, %v748_v52 }
 0x31a   :  { %v863_v39 = vsel %vm850_vm5, %v846_v25, 0.0 }
 0x31c   :  { %874 = vxpose.xlu1.b32.cont [8/16] (narrow) %v858_v42, 8  ;;  %v439_v28 = vpop.xlane.xlu2 %438 }
 0x31d   :  { %1126 = vlog2.f32 %v439_v28  ;;  %v445_v57 = vpop.xlane.xlu1 %444 }
 0x31e   :  { %1128 = vrcp.f32 %v439_v28  ;;  %v442_v15 = vpop.xlane.xlu0 %441 }
 0x31f   :  { %1130 = vlog2.f32 %v442_v15 }
 0x320   :  { %1132 = vrcp.f32 %v442_v15 }
 0x321   :  { %1134 = vlog2.f32 %v445_v57 }
 0x322   :  { %1136 = vrcp.f32 %v445_v57 }
 0x323   :  { %v1127_v46 = vpop.eup %1126 }
 0x324   :  { %875 = vxpose.xlu1.b32.cont [9/16] (narrow) %v859_v63, 8  ;;  %v1129_v59 = vpop.eup %1128  ;;  %v473_v3 = vmul.f32 0.6931472, %v1127_v46  ;;  %v719_v10 = vpop.xlane.xlu2 %718 }
 0x325   :  { %v733_v23 = vmul.f32 %v1129_v59, %v713_v54  ;;  %v1131_v55 = vpop.eup %1130 }
 0x326   :  { %v653_v2 = vsub.f32 %v1671_v11, %v473_v3  ;;  %v1133_v62 = vpop.eup %1132  ;;  %v475_v18 = vmul.f32 0.6931472, %v1131_v55 }
 0x327   :  { %v749_v58 = vsub.f32 %v473_v3, %v733_v23  ;;  %v734_v42 = vmul.f32 %v1133_v62, %v716_v9  ;;  %v1135_v11 = vpop.eup %1134 }
 0x328   :  { %v830_v61 = vsel %vm816_vm2, %v653_v2, %v1587_v31  ;;  %v654_v30 = vsub.f32 %v636_v4, %v475_v18  ;;  %v1137_v56 = vpop.eup %1136  ;;  %v477_v13 = vmul.f32 0.6931472, %v1135_v11 }
 0x329   :  { %v847_v6 = vsel %vm833_vm4, %v830_v61, %v749_v58  ;;  %v750_v48 = vsub.f32 %v475_v18, %v734_v42  ;;  %v735_v36 = vmul.f32 %v1137_v56, %v719_v10 }
 0x32a   :  { %v864_v0 = vsel %vm850_vm5, %v847_v6, 0.0  ;;  %v655_v63 = vsub.f32 %v1685_v47, %v477_v13 }
 0x32b   :  { %v751_v29 = vsub.f32 %v477_v13, %v735_v36 }
 0x32c   :  { %876 = vxpose.xlu1.b32.cont [10/16] (narrow) %v860_v38, 8  ;;  %v799_v35 = vpop.permute.xlu2 %798 }
 0x32d   :  { %v832_v37 = vsel %vm816_vm2, %v655_v63, %v799_v35 }
 0x32e   :  { %v849_v8 = vsel %vm833_vm4, %v832_v37, %v751_v29 }
 0x32f   :  { %v866_v22 = vsel %vm850_vm5, %v849_v8, 0.0 }
 0x331   :  { %v797_v20 = vpop.permute.xlu0 %796 }
 0x332   :  { %v831_v21 = vsel %vm816_vm2, %v654_v30, %v797_v20 }
 0x333   :  { %v848_v31 = vsel %vm833_vm4, %v831_v21, %v750_v48 }
 0x334   :  { %877 = vxpose.xlu1.b32.cont [11/16] (narrow) %v861_v49, 8  ;;  %v865_v14 = vsel %vm850_vm5, %v848_v31, 0.0 }
 0x33c   :  { %878 = vxpose.xlu1.b32.cont [12/16] (narrow) %v862_v5, 8 }
 0x344   :  { %879 = vxpose.xlu1.b32.cont [13/16] (narrow) %v863_v39, 8 }
 0x34c   :  { %880 = vxpose.xlu1.b32.cont [14/16] (narrow) %v864_v0, 8 }
 0x354   :  { %881 = vxpose.xlu1.b32.cont [15/16] (narrow) %v865_v14, 8 }
 0x35c   :  { %882 = vxpose.xlu1.b32.end [16/16] (narrow) %v866_v22, 8 }
 0x388   :  { %v883_v60 = vpop.trf.xlu1 }
 0x389   :  { %899 = vst [vmem:[#allocation2] sm:$0xff] %v883_v60 }
 0x38a   :  { %910 = dma.vmem_to_hbm [thread:$0]  %s906_s28, 128, %s908_s30, [#allocation3]  }
 0x38b   :  { %1162 = dma.done.wait [#allocation3], 128  }
 0x38c   :  { %1163 = vsyncadd [#allocation3], 4294967168 }
 0x38d   :  { %915 = vsyncpa [#allocation3], 1 }

</bundles_post_ra>
